<compile_context>
chip_gen: v7x
topology: tpu7x:2x2x1
jax: 0.10.0
libtpu: 0.0.40
codegen_flags: <defaults>
</compile_context>

<pallas_src>
import functools

import jax
import jax.numpy as jnp
from jax.experimental import pallas as pl
from jax.experimental.pallas import tpu as pltpu

LANE = 128           # lane width (last-dim vreg width)
TILE_R_MAX = 4096    # max sublane rows per streaming block (2 MiB f32 / input)


def _round_up(x, m):
    return ((x + m - 1) // m) * m


def _detected_num_cores():
    """2 only on multi-TensorCore chips (v7x); 1 on v5e/v6e/unknown (always safe)."""
    try:
        kind = jax.devices()[0].device_kind.lower()
    except Exception:
        return 1
    if "7x" in kind or "v7" in kind:
        return 2
    return 1


def _bce_blur_kernel(pred_ref, true_ref, out_ref, acc_ref, *,
                     inv_alpha, n_valid, tile_elems, steps, nblocks):
    c = pl.program_id(0)          # core / "parallel" axis
    i = pl.program_id(1)          # per-core streaming step
    b = c * steps + i             # global block index (may overshoot nblocks-1)

    @pl.when(i == 0)
    def _init():
        acc_ref[...] = jnp.zeros_like(acc_ref)

    x = pred_ref[...].astype(jnp.float32)
    t = true_ref[...].astype(jnp.float32)

    # Stable BCEWithLogitsLoss (reduction='none'); exp(-|x|) reused for sigmoid.
    e = jnp.exp(-jnp.abs(x))
    ope = 1.0 + e
    bce = jnp.maximum(x, 0.0) - x * t + jnp.log1p(e)

    # sigmoid(x): EUP approximate reciprocal + one Newton step (f32-accurate,
    # keeps the divide off the binding VALU slot).
    r = pl.reciprocal(ope, approx=True)
    r = r * (2.0 - ope * r)
    p = jnp.where(x >= 0.0, r, e * r)

    dx = p - t
    alpha_factor = 1.0 - jnp.exp((dx - 1.0) * inv_alpha)
    loss = bce * alpha_factor

    tile_r = loss.shape[0]
    g = tile_r // 8               # tile_r is always a multiple of 8

    # Steady state: reduce each block to one (8,128) vreg and accumulate.
    @pl.when(b < nblocks - 1)
    def _steady():
        acc_ref[...] += loss.reshape(g, 8, LANE).sum(axis=0)

    # Only the globally-last block can contain padding / ragged sublanes.
    @pl.when(b == nblocks - 1)
    def _last_block():
        row = jax.lax.broadcasted_iota(jnp.int32, loss.shape, 0)
        col = jax.lax.broadcasted_iota(jnp.int32, loss.shape, 1)
        gidx = b * tile_elems + row * LANE + col
        masked = jnp.where(gidx < n_valid, loss, 0.0)
        acc_ref[...] += masked.reshape(g, 8, LANE).sum(axis=0)

    # Overshoot blocks (b >= nblocks, only when nblocks % num_cores != 0) fall
    # through both branches and are skipped.

    @pl.when(i == steps - 1)
    def _finalize():
        # One small sublane reduce; the tiny cross-lane sum + mean happen in
        # the (jit-fused) wrapper.
        out_ref[...] = jnp.sum(acc_ref[...], axis=0, keepdims=True)


@functools.partial(jax.jit,
                   static_argnames=("alpha", "max_rows_per_block", "num_cores"))
def bce_blur_with_logits_loss(pred, true, *, alpha=0.05,
                              max_rows_per_block=TILE_R_MAX, num_cores=None):
    """Pallas TPU BCEBlurWithLogitsLoss.forward -> scalar mean (f32).

    pred/true may be f32 or bf16 (bf16 halves HBM traffic; the kernel upcasts
    to f32 internally).
    """
    assert pred.shape == true.shape
    total = int(pred.size)
    inv_alpha = float(1.0 / (alpha + 1e-4))

    pred_flat = pred.reshape(-1)
    true_flat = true.reshape(-1)

    rows = total // LANE
    aligned = rows * LANE

    loss_sum = jnp.float32(0.0)

    if rows > 0:
        pred_2d = pred_flat[:aligned].reshape(rows, LANE)
        true_2d = true_flat[:aligned].reshape(rows, LANE)

        itemsize = max(pred_2d.dtype.itemsize, true_2d.dtype.itemsize)
        # Sublane granularity: 8 rows for 32-bit, 16 for bf16, 32 for 8-bit.
        sub = 8 * max(1, 4 // min(pred_2d.dtype.itemsize, true_2d.dtype.itemsize))
        max_rows = max(sub, _round_up(int(max_rows_per_block), sub))
        tile_r = min(max_rows, _round_up(rows, sub))
        tile_elems = tile_r * LANE
        nblocks = pl.cdiv(rows, tile_r)

        ncores = _detected_num_cores() if num_cores is None else int(num_cores)
        ncores = max(1, min(ncores, nblocks))
        steps = pl.cdiv(nblocks, ncores)

        def in_map(c, i):
            # Clamp so the tail core's overshoot never DMAs out of bounds; the
            # kernel skips accumulation for those duplicate blocks.
            return (jnp.minimum(c * steps + i, nblocks - 1), 0)

        kernel = functools.partial(
            _bce_blur_kernel,
            inv_alpha=inv_alpha,
            n_valid=aligned,
            tile_elems=tile_elems,
            steps=steps,
            nblocks=nblocks,
        )

        # Double-buffered inputs + generous allowance for Mosaic-materialized
        # f32 intermediates; floored at the default scoped limit, capped well
        # under every generation's physical VMEM (128 MiB v5e/v6e, 64 MiB v7x).
        tile_in_bytes = tile_r * LANE * itemsize
        tile_f32_bytes = tile_r * LANE * 4
        vmem_limit = int(min(max(2 * 2 * tile_in_bytes + 12 * tile_f32_bytes + (2 << 20),
                                 16 << 20),
                             56 << 20))

        cost = pl.CostEstimate(
            flops=22 * aligned,
            transcendentals=4 * aligned,
            bytes_accessed=aligned * (pred_2d.dtype.itemsize + true_2d.dtype.itemsize)
            + ncores * LANE * 4,
        )

        partials = pl.pallas_call(
            kernel,
            out_shape=jax.ShapeDtypeStruct((1, ncores * LANE), jnp.float32),
            grid_spec=pltpu.PrefetchScalarGridSpec(
                num_scalar_prefetch=0,
                grid=(ncores, steps),
                in_specs=[
                    pl.BlockSpec((tile_r, LANE), in_map),
                    pl.BlockSpec((tile_r, LANE), in_map),
                ],
                out_specs=pl.BlockSpec((1, LANE), lambda c, i: (0, c)),
                scratch_shapes=[pltpu.VMEM((8, LANE), jnp.float32)],
            ),
            compiler_params=pltpu.CompilerParams(
                dimension_semantics=("parallel", "arbitrary"),
                vmem_limit_bytes=vmem_limit,
            ),
            cost_estimate=cost,
        )(pred_2d, true_2d)

        loss_sum = loss_sum + jnp.sum(partials)

    if aligned < total:
        # Tiny (<128 element) ragged tail: plain JAX, fuses under jit. This
        # replaces the old full-tensor jnp.pad copy for non-aligned sizes.
        xt = pred_flat[aligned:].astype(jnp.float32)
        tt = true_flat[aligned:].astype(jnp.float32)
        et = jnp.exp(-jnp.abs(xt))
        bce_t = jnp.maximum(xt, 0.0) - xt * tt + jnp.log1p(et)
        pt = jnp.where(xt >= 0.0, 1.0 / (1.0 + et), et / (1.0 + et))
        af_t = 1.0 - jnp.exp((pt - tt - 1.0) * inv_alpha)
        loss_sum = loss_sum + jnp.sum(bce_t * af_t)

    return loss_sum / jnp.float32(total)


def _reference(pred, true, alpha=0.05):
    x = pred.astype(jnp.float32)
    t = true.astype(jnp.float32)
    loss = jnp.maximum(x, 0.0) - x * t + jnp.log1p(jnp.exp(-jnp.abs(x)))
    p = jax.nn.sigmoid(x)
    af = 1.0 - jnp.exp((p - t - 1.0) / (alpha + 1e-4))
    return jnp.mean(loss * af)


if __name__ == "__main__":
    key = jax.random.PRNGKey(0)
    k1, k2, k3, k4, k5, k6 = jax.random.split(key, 6)

    # Test 1: canonical small detection-logits shape, lane-aligned, one block.
    shape1 = (2, 4, 16, 16)
    pred1 = jax.random.normal(k1, shape1, dtype=jnp.float32)
    true1 = (jax.random.uniform(k2, shape1) > 0.5).astype(jnp.float32)
    out1 = jax.block_until_ready(bce_blur_with_logits_loss(pred1, true1))
    ref1 = _reference(pred1, true1)
    assert jnp.allclose(out1, ref1, rtol=1e-4, atol=1e-6), (out1, ref1)

    # Test 2: non-128-aligned total -> ragged last block mask + wrapper tail.
    shape2 = (3, 5, 7, 11)  # 1155 elements
    pred2 = jax.random.normal(k3, shape2, dtype=jnp.float32)
    true2 = (jax.random.uniform(k4, shape2) > 0.5).astype(jnp.float32)
    out2 = jax.block_until_ready(bce_blur_with_logits_loss(pred2, true2))
    ref2 = _reference(pred2, true2)
    assert jnp.allclose(out2, ref2, rtol=1e-4, atol=1e-6), (out2, ref2)

    # Test 3: bf16 inputs, multi-block grid, forced 2-way core split with an
    # overshoot (clamped/skipped) block and a ragged last block.
    shape3 = (4, 6, 20, 40)  # 19200 elements -> 150 rows of 128
    pred3 = jax.random.normal(k5, shape3, dtype=jnp.bfloat16)
    true3 = (jax.random.uniform(k6, shape3) > 0.5).astype(jnp.bfloat16)
    out3 = jax.block_until_ready(
        bce_blur_with_logits_loss(pred3, true3, max_rows_per_block=32, num_cores=2))
    ref3 = _reference(pred3, true3)
    assert jnp.allclose(out3, ref3, rtol=2e-4, atol=1e-6), (out3, ref3)

    print("KERNEL_OK")
</pallas_src>

<mosaic_0001>
module attributes {stable_mosaic.version = 11 : i64} {
  func.func @_bce_blur_kernel(%arg0: i32, %arg1: i32, %arg2: memref<16x128xf32, #tpu.memory_space<vmem>>, %arg3: memref<16x128xf32, #tpu.memory_space<vmem>>, %arg4: memref<1x128xf32, #tpu.memory_space<vmem>>, %arg5: memref<8x128xf32, #tpu.memory_space<vmem>>) attributes {dimension_semantics = [#tpu.dimension_semantics<parallel>, #tpu.dimension_semantics<arbitrary>], iteration_bounds = array<i64: 1, 1>, scalar_prefetch = 0 : i64, scratch_operands = 1 : i64, tpu.core_type = #tpu.core_type<tc>, window_params = [{transform_indices = @transform_0, window_bounds = array<i64: 16, 128>}, {transform_indices = @transform_1, window_bounds = array<i64: 16, 128>}, {transform_indices = @transform_2, window_bounds = array<i64: 1, 128>}]} {
    %c1_i32 = arith.constant 1 : i32
    %0 = arith.muli %arg0, %c1_i32 : i32
    %1 = arith.addi %0, %arg1 : i32
    %c0_i32 = arith.constant 0 : i32
    %2 = arith.cmpi eq, %arg1, %c0_i32 : i32
    %3 = arith.extui %2 : i1 to i32
    %c0_i32_0 = arith.constant 0 : i32
    %4 = arith.cmpi ne, %3, %c0_i32_0 : i32
    scf.if %4 {
      %cst_17 = arith.constant 0.000000e+00 : f32
      %46 = vector.broadcast %cst_17 : f32 to vector<8x128xf32>
      %c0_18 = arith.constant 0 : index
      %c0_19 = arith.constant 0 : index
      %47 = vector.load %arg5[%c0_18, %c0_19] : memref<8x128xf32, #tpu.memory_space<vmem>>, vector<8x128xf32>
      tpu.vector_store %arg5[%c0_18, %c0_19], %46 {strides = array<i32>} : memref<8x128xf32, #tpu.memory_space<vmem>>, vector<8x128xf32>,
    } else {
    }
    %c0 = arith.constant 0 : index
    %c0_1 = arith.constant 0 : index
    %5 = vector.load %arg2[%c0, %c0_1] : memref<16x128xf32, #tpu.memory_space<vmem>>, vector<16x128xf32>
    %c0_2 = arith.constant 0 : index
    %c0_3 = arith.constant 0 : index
    %6 = vector.load %arg3[%c0_2, %c0_3] : memref<16x128xf32, #tpu.memory_space<vmem>>, vector<16x128xf32>
    %7 = math.absf %5 : vector<16x128xf32>
    %cst = arith.constant 0.000000e+00 : f32
    %8 = vector.broadcast %cst : f32 to vector<16x128xf32>
    %9 = arith.subf %8, %7 : vector<16x128xf32>
    %10 = math.exp %9 : vector<16x128xf32>
    %cst_4 = arith.constant 1.000000e+00 : f32
    %11 = vector.broadcast %cst_4 : f32 to vector<16x128xf32>
    %12 = arith.addf %11, %10 : vector<16x128xf32>
    %cst_5 = arith.constant 0.000000e+00 : f32
    %13 = vector.broadcast %cst_5 : f32 to vector<16x128xf32>
    %14 = arith.maximumf %5, %13 : vector<16x128xf32>
    %15 = arith.mulf %5, %6 : vector<16x128xf32>
    %16 = arith.subf %14, %15 : vector<16x128xf32>
    %17 = math.log1p %10 : vector<16x128xf32>
    %18 = arith.addf %16, %17 : vector<16x128xf32>
    %19 = tpu.reciprocal %12 {approx = true} : vector<16x128xf32> -> vector<16x128xf32>
    %20 = arith.mulf %12, %19 : vector<16x128xf32>
    %cst_6 = arith.constant 2.000000e+00 : f32
    %21 = vector.broadcast %cst_6 : f32 to vector<16x128xf32>
    %22 = arith.subf %21, %20 : vector<16x128xf32>
    %23 = arith.mulf %19, %22 : vector<16x128xf32>
    %cst_7 = arith.constant 0.000000e+00 : f32
    %24 = vector.broadcast %cst_7 : f32 to vector<16x128xf32>
    %25 = arith.cmpf oge, %5, %24 : vector<16x128xf32>
    %26 = arith.mulf %10, %23 : vector<16x128xf32>
    %27 = arith.select %25, %23, %26 : vector<16x128xi1>, vector<16x128xf32>
    %28 = arith.subf %27, %6 : vector<16x128xf32>
    %cst_8 = arith.constant 1.000000e+00 : f32
    %29 = vector.broadcast %cst_8 : f32 to vector<16x128xf32>
    %30 = arith.subf %28, %29 : vector<16x128xf32>
    %cst_9 = arith.constant 19.9600792 : f32
    %31 = vector.broadcast %cst_9 : f32 to vector<16x128xf32>
    %32 = arith.mulf %30, %31 : vector<16x128xf32>
    %33 = math.exp %32 : vector<16x128xf32>
    %cst_10 = arith.constant 1.000000e+00 : f32
    %34 = vector.broadcast %cst_10 : f32 to vector<16x128xf32>
    %35 = arith.subf %34, %33 : vector<16x128xf32>
    %36 = arith.mulf %18, %35 : vector<16x128xf32>
    %c0_i32_11 = arith.constant 0 : i32
    %37 = arith.cmpi slt, %1, %c0_i32_11 : i32
    %38 = arith.extui %37 : i1 to i32
    %c0_i32_12 = arith.constant 0 : i32
    %39 = arith.cmpi ne, %38, %c0_i32_12 : i32
    scf.if %39 {
      %c0_17 = arith.constant 0 : index
      %c0_18 = arith.constant 0 : index
      %46 = vector.load %arg5[%c0_17, %c0_18] : memref<8x128xf32, #tpu.memory_space<vmem>>, vector<8x128xf32>
      %47 = vector.shape_cast %36 : vector<16x128xf32> to vector<2x8x128xf32>
      %cst_19 = arith.constant dense<0.000000e+00> : vector<8x128xf32>
      %48 = vector.multi_reduction <add>, %47, %cst_19 [0] : vector<2x8x128xf32> to vector<8x128xf32>
      %49 = arith.addf %46, %48 : vector<8x128xf32>
      %c0_20 = arith.constant 0 : index
      %c0_21 = arith.constant 0 : index
      %50 = vector.load %arg5[%c0_20, %c0_21] : memref<8x128xf32, #tpu.memory_space<vmem>>, vector<8x128xf32>
      tpu.vector_store %arg5[%c0_20, %c0_21], %49 {strides = array<i32>} : memref<8x128xf32, #tpu.memory_space<vmem>>, vector<8x128xf32>,
    } else {
    }
    %c0_i32_13 = arith.constant 0 : i32
    %40 = arith.cmpi eq, %1, %c0_i32_13 : i32
    %41 = arith.extui %40 : i1 to i32
    %c0_i32_14 = arith.constant 0 : i32
    %42 = arith.cmpi ne, %41, %c0_i32_14 : i32
    scf.if %42 {
      %46 = tpu.iota {dimensions = array<i32: 0>} : vector<16x128xi32>
      %47 = tpu.iota {dimensions = array<i32: 1>} : vector<16x128xi32>
      %c2048_i32 = arith.constant 2048 : i32
      %48 = arith.muli %1, %c2048_i32 : i32
      %c128_i32 = arith.constant 128 : i32
      %49 = vector.broadcast %c128_i32 : i32 to vector<16x128xi32>
      %50 = arith.muli %46, %49 : vector<16x128xi32>
      %51 = vector.broadcast %48 : i32 to vector<16x128xi32>
      %52 = arith.addi %51, %50 : vector<16x128xi32>
      %53 = arith.addi %52, %47 : vector<16x128xi32>
      %c2048_i32_17 = arith.constant 2048 : i32
      %54 = vector.broadcast %c2048_i32_17 : i32 to vector<16x128xi32>
      %55 = arith.cmpi slt, %53, %54 : vector<16x128xi32>
      %cst_18 = arith.constant 0.000000e+00 : f32
      %56 = vector.broadcast %cst_18 : f32 to vector<16x128xf32>
      %57 = arith.select %55, %36, %56 : vector<16x128xi1>, vector<16x128xf32>
      %c0_19 = arith.constant 0 : index
      %c0_20 = arith.constant 0 : index
      %58 = vector.load %arg5[%c0_19, %c0_20] : memref<8x128xf32, #tpu.memory_space<vmem>>, vector<8x128xf32>
      %59 = vector.shape_cast %57 : vector<16x128xf32> to vector<2x8x128xf32>
      %cst_21 = arith.constant dense<0.000000e+00> : vector<8x128xf32>
      %60 = vector.multi_reduction <add>, %59, %cst_21 [0] : vector<2x8x128xf32> to vector<8x128xf32>
      %61 = arith.addf %58, %60 : vector<8x128xf32>
      %c0_22 = arith.constant 0 : index
      %c0_23 = arith.constant 0 : index
      %62 = vector.load %arg5[%c0_22, %c0_23] : memref<8x128xf32, #tpu.memory_space<vmem>>, vector<8x128xf32>
      tpu.vector_store %arg5[%c0_22, %c0_23], %61 {strides = array<i32>} : memref<8x128xf32, #tpu.memory_space<vmem>>, vector<8x128xf32>,
    } else {
    }
    %c0_i32_15 = arith.constant 0 : i32
    %43 = arith.cmpi eq, %arg1, %c0_i32_15 : i32
    %44 = arith.extui %43 : i1 to i32
    %c0_i32_16 = arith.constant 0 : i32
    %45 = arith.cmpi ne, %44, %c0_i32_16 : i32
    scf.if %45 {
      %c0_17 = arith.constant 0 : index
      %c0_18 = arith.constant 0 : index
      %46 = vector.load %arg5[%c0_17, %c0_18] : memref<8x128xf32, #tpu.memory_space<vmem>>, vector<8x128xf32>
      %cst_19 = arith.constant dense<0.000000e+00> : vector<128xf32>
      %47 = vector.multi_reduction <add>, %46, %cst_19 [0] : vector<8x128xf32> to vector<128xf32>
      %48 = vector.shape_cast %47 : vector<128xf32> to vector<1x128xf32>
      %c0_20 = arith.constant 0 : index
      %c0_21 = arith.constant 0 : index
      %49 = vector.load %arg4[%c0_20, %c0_21] : memref<1x128xf32, #tpu.memory_space<vmem>>, vector<1x128xf32>
      tpu.vector_store %arg4[%c0_20, %c0_21], %48 {strides = array<i32>} : memref<1x128xf32, #tpu.memory_space<vmem>>, vector<1x128xf32>,
    } else {
    }
    return
  }
  func.func @transform_0(%arg0: i32, %arg1: i32) -> (i32, i32) {
    %c1_i32 = arith.constant 1 : i32
    %0 = arith.muli %arg0, %c1_i32 : i32
    %1 = arith.addi %0, %arg1 : i32
    %c0_i32 = arith.constant 0 : i32
    %2 = arith.minsi %1, %c0_i32 : i32
    %c0_i32_0 = arith.constant 0 : i32
    %c0_i32_1 = arith.constant 0 : i32
    return %2, %c0_i32_0 : i32, i32
  }
  func.func @transform_1(%arg0: i32, %arg1: i32) -> (i32, i32) {
    %c1_i32 = arith.constant 1 : i32
    %0 = arith.muli %arg0, %c1_i32 : i32
    %1 = arith.addi %0, %arg1 : i32
    %c0_i32 = arith.constant 0 : i32
    %2 = arith.minsi %1, %c0_i32 : i32
    %c0_i32_0 = arith.constant 0 : i32
    %c0_i32_1 = arith.constant 0 : i32
    return %2, %c0_i32_0 : i32, i32
  }
  func.func @transform_2(%arg0: i32, %arg1: i32) -> (i32, i32) {
    %c0_i32 = arith.constant 0 : i32
    %c0_i32_0 = arith.constant 0 : i32
    return %c0_i32, %arg0 : i32, i32
  }
}

</mosaic_0001>

<bundles_post_ra>
// kernel: bce_blur_with_logits_loss.1
= control target key start
LH: loop header
LB: loop body
LE: loop exit
PB: predicated region body
PF: predicated region fallthrough
CT: control target
= control target key end

     0   :  { %v161_v28 = vlaneseq  ;;  %s269_s0 = inlined_call_operand.vmem [shape: f32[16,128], index: 0, kind: input, shape index: {}]   ;;  %s270_s1 = inlined_call_operand.vmem [shape: f32[16,128], index: 1, kind: input, shape index: {}]   ;;  %s271_s2 = inlined_call_operand.vmem [shape: f32[1,128], index: 2, kind: output, shape index: {}]  }
   0x1   :  { %v245_v0 = vld [vmem:[%s269_s0] sm:$0xff]  ;;  %v250_v1 = vld [vmem:[%s269_s0 + $0x8] sm:$0xff] }
   0x2   :  { %v85_v2 = vand.u32 2147483647, %v245_v0  ;;  %v86_v3 = vand.u32 2147483647, %v250_v1  ;;  %vm129_vm0 = vcmp.ge.f32.partialorder %v245_v0, 0.0  ;;  %v83_v20 = vld [vmem:[%s270_s1] sm:$0xff] }
   0x3   :  { %vm130_vm1 = vcmp.ge.f32.partialorder %v250_v1, 0.0  ;;  %v84_v22 = vld [vmem:[%s270_s1 + $0x8] sm:$0xff]  ;;  %v162_v35 = vshrl.u32 %v161_v28, 7  ;;  %v95_v44 = vmax.f32 %v245_v0, 0.0  ;;  %v97_v45 = vmul.f32 %v83_v20, %v245_v0 }
   0x4   :  { %v87_v4 = vsub.f32 0.0, %v85_v2  ;;  %v88_v5 = vsub.f32 0.0, %v86_v3  ;;  %v96_v47 = vmax.f32 %v250_v1, 0.0  ;;  %v98_v48 = vmul.f32 %v84_v22, %v250_v1 }
   0x5   :  { %v163_v46 = vadd.s32 8, %v162_v35  ;;  %v165_v53 = vand.u32 127, %v161_v28  ;;  %v167_v54 = vmul.u32 128, %v162_v35  ;;  %v99_v55 = vsub.f32 %v95_v44, %v97_v45 }
   0x6   :  { %v89_v6 = vmul.f32 1.442695, %v87_v4  ;;  %v91_v7 = vmul.f32 1.442695, %v88_v5  ;;  %v100_v57 = vsub.f32 %v96_v47, %v98_v48 }
   0x7   :  { %v168_v56 = vmul.u32 128, %v163_v46  ;;  %v172_v60 = vadd.s32 %v167_v54, %v165_v53 }
   0x8   :  { %211 = vpow2.f32 %v89_v6 }
   0x9   :  { %213 = vpow2.f32 %v91_v7  ;;  %v173_v62 = vadd.s32 %v168_v56, %v165_v53  ;;  %vm174_vm4 = vcmp.lt.s32.totalorder %v172_v60, 2048 }
   0xb   :  { %vm175_vm5 = vcmp.lt.s32.totalorder %v173_v62, 2048 }
  0x12   :  { %v212_v8 = vpop.eup %211 }
  0x13   :  { %v214_v9 = vpop.eup %213  ;;  %v93_v10 = vadd.f32 1.0, %v212_v8  ;;  %v104_v29 = vmul.f32 -0.5, %v212_v8  ;;  %v107_v39 = vand.u32 2147483647, %v212_v8 }
  0x14   :  { %v94_v11 = vadd.f32 1.0, %v214_v9  ;;  %v113_v31 = vmul.f32 -0.5, %v214_v9  ;;  %v116_v43 = vand.u32 2147483647, %v214_v9 }
  0x15   :  { %215 = vrcp.f32 %v93_v10  ;;  %v105_v36 = vadd.f32 1.0, %v104_v29  ;;  %vm108_vm2 = vcmp.lt.f32.partialorder %v107_v39, 0.0004427343 }
  0x16   :  { %217 = vrcp.f32 %v94_v11  ;;  %v114_v40 = vadd.f32 1.0, %v113_v31  ;;  %vm117_vm3 = vcmp.lt.f32.partialorder %v116_v43, 0.0004427343 }
  0x17   :  { %219 = vlog2.f32 %v93_v10  ;;  %v106_v50 = vmul.f32 %v212_v8, %v105_v36 }
  0x18   :  { %221 = vlog2.f32 %v94_v11  ;;  %v115_v52 = vmul.f32 %v214_v9, %v114_v40 }
  0x1f   :  { %v216_v12 = vpop.eup %215 }
  0x20   :  { %v218_v13 = vpop.eup %217  ;;  %v123_v14 = vmul.f32 %v216_v12, %v93_v10 }
  0x21   :  { %v124_v15 = vmul.f32 %v218_v13, %v94_v11  ;;  %v220_v38 = vpop.eup %219 }
  0x22   :  { %v125_v16 = vsub.f32 2.0, %v123_v14  ;;  %v222_v42 = vpop.eup %221  ;;  %v103_v49 = vmul.f32 0.6931472, %v220_v38 }
  0x23   :  { %v126_v17 = vsub.f32 2.0, %v124_v15  ;;  %v112_v51 = vmul.f32 0.6931472, %v222_v42 }
  0x24   :  { %v127_v18 = vmul.f32 %v216_v12, %v125_v16  ;;  %v109_v58 = vsel %vm108_vm2, %v106_v50, %v103_v49 }
  0x25   :  { %v128_v19 = vmul.f32 %v218_v13, %v126_v17  ;;  %v118_v59 = vsel %vm117_vm3, %v115_v52, %v112_v51  ;;  %v119_v61 = vadd.f32 %v109_v58, %v99_v55 }
  0x26   :  { %v131_v21 = vmul.f32 %v212_v8, %v127_v18  ;;  %v120_v0 = vadd.f32 %v118_v59, %v100_v57 }
  0x27   :  { %v132_v23 = vmul.f32 %v214_v9, %v128_v19 }
  0x28   :  { %v133_v24 = vsel %vm129_vm0, %v127_v18, %v131_v21 }
  0x29   :  { %v134_v25 = vsel %vm130_vm1, %v128_v19, %v132_v23  ;;  %v135_v26 = vsub.f32 %v133_v24, %v83_v20 }
  0x2a   :  { %v136_v27 = vsub.f32 %v134_v25, %v84_v22 }
  0x2b   :  { %v209_v30 = vadd.f32 -1.0, %v135_v26 }
  0x2c   :  { %v210_v32 = vadd.f32 -1.0, %v136_v27 }
  0x2d   :  { %v139_v33 = vmul.f32 19.96008, %v209_v30 }
  0x2e   :  { %v140_v34 = vmul.f32 19.96008, %v210_v32 }
  0x2f   :  { %v141_v37 = vmul.f32 1.442695, %v139_v33 }
  0x30   :  { %v143_v41 = vmul.f32 1.442695, %v140_v34 }
  0x31   :  { %223 = vpow2.f32 %v141_v37 }
  0x32   :  { %225 = vpow2.f32 %v143_v41 }
  0x3b   :  { %v224_v63 = vpop.eup %223 }
  0x3c   :  { %v226_v2 = vpop.eup %225  ;;  %v145_v1 = vsub.f32 1.0, %v224_v63 }
  0x3d   :  { %v146_v3 = vsub.f32 1.0, %v226_v2 }
  0x3e   :  { %v147_v4 = vmul.f32 %v145_v1, %v119_v61 }
  0x3f   :  { %v148_v5 = vmul.f32 %v146_v3, %v120_v0 }
  0x40   :  { %v176_v6 = vsel %vm174_vm4, %v147_v4, 0.0 }
  0x41   :  { %v177_v7 = vsel %vm175_vm5, %v148_v5, 0.0 }
  0x42   :  { %v179_v8 = vadd.f32 %v177_v7, %v176_v6 }
  0x44   :  { %v186_v9 = vrot.slane %v179_v8, 4 }
  0x46   :  { %v187_v10 = vadd.f32 %v186_v9, %v179_v8 }
  0x48   :  { %v188_v11 = vrot.slane %v187_v10, 2 }
  0x4a   :  { %v189_v12 = vadd.f32 %v188_v11, %v187_v10 }
  0x4c   :  { %v190_v13 = vrot.slane %v189_v12, 1 }
  0x4e   :  { %v191_v14 = vadd.f32 %v190_v13, %v189_v12 }
  0x50   :  { %192 = vst [vmem:[%s271_s2] sm:$0x1] %v191_v14 }

</bundles_post_ra>
